<compile_context>
chip_gen: v7x
topology: tpu7x:2x2x1
jax: 0.10.0
libtpu: 0.0.40
codegen_flags: <defaults>
</compile_context>

<pallas_src>
import jax
import jax.numpy as jnp
from jax.experimental import pallas as pl
from jax.experimental.pallas import tpu as pltpu


def _elu(v):
    # PyTorch nn.ELU(alpha=1.0): v if v > 0 else alpha * (exp(v) - 1)
    return jnp.where(v > 0, v, jnp.exp(v) - 1.0)


def _round_up(x, m):
    return ((x + m - 1) // m) * m


def _sublane(dtype):
    # sublane packing: 8 for f32, 16 for bf16, 32 for int8/fp8
    itemsize = jnp.dtype(dtype).itemsize
    return max(8, 32 // max(1, itemsize))


def _vmem_capacity_bytes():
    try:
        return int(pltpu.get_tpu_info().vmem_capacity_bytes)
    except Exception:
        return 64 * 2**20   # conservative default (v7x per-TensorCore VMEM)


def mlp_kernel(x_ref, w1_ref, b1_ref, w2_ref, b2_ref, o_ref):
    # layer 0: Linear + ELU, f32 accumulation on the MXU
    h = jnp.dot(x_ref[...], w1_ref[...], preferred_element_type=jnp.float32)
    h = _elu(h + b1_ref[...].astype(jnp.float32))        # b1 is (1, H1), broadcast over rows
    # layer 1: feed the MXU the native-dtype W2 (bf16-in/f32-acc fast path);
    # cast the activation down rather than upcasting the weights.
    w2 = w2_ref[...]
    if w2.dtype != jnp.float32:
        h = h.astype(w2.dtype)
    o = jnp.dot(h, w2, preferred_element_type=jnp.float32)
    o = _elu(o + b2_ref[...].astype(jnp.float32))
    o_ref[...] = o.astype(o_ref.dtype)


def mlp_forward(x, w1, b1, w2, b2, *, batch_tile=2048):
    """x: (..., D_in); w1: (D_in, H1); b1: (H1,); w2: (H1, H2); b2: (H2,) -> (..., H2)."""
    Din = w1.shape[0]
    H1 = w1.shape[1]
    H2 = w2.shape[1]

    orig_shape = x.shape
    x2 = x.reshape(-1, Din)            # MLP flattens everything but the feature dim
    B = x2.shape[0]
    dtype = x2.dtype
    sub = _sublane(dtype)

    b1r = b1.reshape(1, H1)
    b2r = b2.reshape(1, H2)

    # --- batch-tile selection (no feature-dim padding anywhere) -------------
    capacity = _vmem_capacity_bytes()
    budget = min(capacity // 2, 96 * 2**20)

    isz = jnp.dtype(dtype).itemsize
    wsz = jnp.dtype(w1.dtype).itemsize

    def vmem_bytes(tb):
        streamed = 2 * tb * Din * isz + 2 * tb * H2 * isz            # x / out, double-buffered
        weights = 2 * (Din * H1 + H1 + H1 * H2 + H2) * wsz           # also double-buffered
        interm = tb * (H1 + H2) * 4                                  # f32 working set
        return streamed + weights + interm

    n_tiles = max(1, -(-B // batch_tile))
    if B > 2 * sub:
        n_tiles = max(n_tiles, 2)       # v7x: give both TensorCores a grid step
    TB = _round_up(-(-B // n_tiles), sub)
    while TB > sub and vmem_bytes(TB) > budget:
        n_tiles *= 2
        TB = _round_up(-(-B // n_tiles), sub)
    B_p = n_tiles * TB

    x_p = x2 if B_p == B else jnp.zeros((B_p, Din), dtype).at[:B].set(x2)

    cost = pl.CostEstimate(
        flops=2 * B_p * (Din * H1 + H1 * H2),
        transcendentals=B_p * (H1 + H2),                              # exp inside ELU
        bytes_accessed=(B_p * Din * isz + B_p * H2 * isz
                        + (Din * H1 + H1 + H1 * H2 + H2) * wsz),
    )

    # Explicit VMEM limit: generous vs. our needs (v5e's scoped default is only
    # 16 MiB) but with ~15% headroom below the physical per-core capacity.
    vmem_limit = int(min(max(2 * vmem_bytes(TB), 32 * 2**20), capacity * 17 // 20))

    out_p = pl.pallas_call(
        mlp_kernel,
        out_shape=jax.ShapeDtypeStruct((B_p, H2), dtype),
        grid=(n_tiles,),
        in_specs=[
            pl.BlockSpec((TB, Din), lambda i: (i, 0)),    # x: streamed over batch, unpadded
            pl.BlockSpec((Din, H1), lambda i: (0, 0)),    # W1: VMEM-resident
            pl.BlockSpec((1, H1), lambda i: (0, 0)),      # b1
            pl.BlockSpec((H1, H2), lambda i: (0, 0)),     # W2
            pl.BlockSpec((1, H2), lambda i: (0, 0)),      # b2
        ],
        out_specs=pl.BlockSpec((TB, H2), lambda i: (i, 0)),
        compiler_params=pltpu.CompilerParams(
            dimension_semantics=("parallel",),            # shard batch tiles over TCs (v7x)
            vmem_limit_bytes=vmem_limit,
        ),
        cost_estimate=cost,
    )(x_p, w1, b1r, w2, b2r)

    out = out_p[:B]
    if len(orig_shape) > 2:
        out = out.reshape(orig_shape[:-1] + (H2,))
    return out


def mlp_reference(x, w1, b1, w2, b2):
    h = _elu(x @ w1 + b1)
    return _elu(h @ w2 + b2)


if __name__ == "__main__":
    # pins = {'dim': 16}, phidden = {'dim': 32, 'nlayers': 2, 'nn_lin': 'ELU'}
    B, D_IN, H = 8, 16, 32

    key = jax.random.PRNGKey(0)
    kx, kw1, kb1, kw2, kb2 = jax.random.split(key, 5)

    x = jax.random.normal(kx, (B, D_IN), dtype=jnp.float32)
    # Deterministic synthetic parameter init (stand-in for init_module / xavier).
    w1 = jax.random.normal(kw1, (D_IN, H), dtype=jnp.float32) * (1.0 / jnp.sqrt(D_IN))
    b1 = jax.random.normal(kb1, (H,), dtype=jnp.float32) * 0.01
    w2 = jax.random.normal(kw2, (H, H), dtype=jnp.float32) * (1.0 / jnp.sqrt(H))
    b2 = jax.random.normal(kb2, (H,), dtype=jnp.float32) * 0.01

    out = jax.block_until_ready(mlp_forward(x, w1, b1, w2, b2))
    ref = mlp_reference(x, w1, b1, w2, b2)
    assert out.shape == (B, H)
    assert jnp.allclose(out, ref, atol=1e-5, rtol=1e-5), "mismatch vs reference (small)"

    # Larger batch: exercises the multi-tile grid path (grid > 1) and batch padding.
    B2 = 300
    x2 = jax.random.normal(jax.random.PRNGKey(1), (B2, D_IN), dtype=jnp.float32)
    out2 = jax.block_until_ready(mlp_forward(x2, w1, b1, w2, b2))
    ref2 = mlp_reference(x2, w1, b1, w2, b2)
    assert out2.shape == (B2, H)
    assert jnp.allclose(out2, ref2, atol=1e-5, rtol=1e-5), "mismatch vs reference (tiled)"

    print("KERNEL_OK")
</pallas_src>

<mosaic_0001>
module attributes {stable_mosaic.version = 11 : i64} {
  func.func @mlp_kernel(%arg0: i32, %arg1: memref<8x16xf32, #tpu.memory_space<vmem>>, %arg2: memref<16x32xf32, #tpu.memory_space<vmem>>, %arg3: memref<1x32xf32, #tpu.memory_space<vmem>>, %arg4: memref<32x32xf32, #tpu.memory_space<vmem>>, %arg5: memref<1x32xf32, #tpu.memory_space<vmem>>, %arg6: memref<8x32xf32, #tpu.memory_space<vmem>>) attributes {dimension_semantics = [#tpu.dimension_semantics<parallel>], iteration_bounds = array<i64: 1>, scalar_prefetch = 0 : i64, scratch_operands = 0 : i64, tpu.core_type = #tpu.core_type<tc>, window_params = [{transform_indices = @transform_0, window_bounds = array<i64: 8, 16>}, {pipeline_mode = #tpu.pipeline_mode<synchronous>, transform_indices = @transform_1, window_bounds = array<i64: 16, 32>}, {pipeline_mode = #tpu.pipeline_mode<synchronous>, transform_indices = @transform_2, window_bounds = array<i64: 1, 32>}, {pipeline_mode = #tpu.pipeline_mode<synchronous>, transform_indices = @transform_3, window_bounds = array<i64: 32, 32>}, {pipeline_mode = #tpu.pipeline_mode<synchronous>, transform_indices = @transform_4, window_bounds = array<i64: 1, 32>}, {transform_indices = @transform_5, window_bounds = array<i64: 8, 32>}]} {
    %c0 = arith.constant 0 : index
    %c0_0 = arith.constant 0 : index
    %0 = vector.load %arg1[%c0, %c0_0] : memref<8x16xf32, #tpu.memory_space<vmem>>, vector<8x16xf32>
    %c0_1 = arith.constant 0 : index
    %c0_2 = arith.constant 0 : index
    %1 = vector.load %arg2[%c0_1, %c0_2] : memref<16x32xf32, #tpu.memory_space<vmem>>, vector<16x32xf32>
    %cst = arith.constant dense<0.000000e+00> : vector<8x32xf32>
    %2 = tpu.matmul %0, %1, %cst {dimension_numbers = #tpu.dot_dimension_numbers<[1], [0], [0], [1], [0, 0, 1, 1], [], []>} : vector<8x16xf32>, vector<16x32xf32>, vector<8x32xf32> -> vector<8x32xf32>
    %c0_3 = arith.constant 0 : index
    %c0_4 = arith.constant 0 : index
    %3 = vector.load %arg3[%c0_3, %c0_4] : memref<1x32xf32, #tpu.memory_space<vmem>>, vector<1x32xf32>
    %4 = vector.broadcast %3 : vector<1x32xf32> to vector<8x32xf32>
    %5 = arith.addf %2, %4 : vector<8x32xf32>
    %cst_5 = arith.constant 0.000000e+00 : f32
    %6 = vector.broadcast %cst_5 : f32 to vector<8x32xf32>
    %7 = arith.cmpf ogt, %5, %6 : vector<8x32xf32>
    %8 = math.exp %5 : vector<8x32xf32>
    %cst_6 = arith.constant 1.000000e+00 : f32
    %9 = vector.broadcast %cst_6 : f32 to vector<8x32xf32>
    %10 = arith.subf %8, %9 : vector<8x32xf32>
    %11 = arith.select %7, %5, %10 : vector<8x32xi1>, vector<8x32xf32>
    %c0_7 = arith.constant 0 : index
    %c0_8 = arith.constant 0 : index
    %12 = vector.load %arg4[%c0_7, %c0_8] : memref<32x32xf32, #tpu.memory_space<vmem>>, vector<32x32xf32>
    %cst_9 = arith.constant dense<0.000000e+00> : vector<8x32xf32>
    %13 = tpu.matmul %11, %12, %cst_9 {dimension_numbers = #tpu.dot_dimension_numbers<[1], [0], [0], [1], [0, 0, 1, 1], [], []>} : vector<8x32xf32>, vector<32x32xf32>, vector<8x32xf32> -> vector<8x32xf32>
    %c0_10 = arith.constant 0 : index
    %c0_11 = arith.constant 0 : index
    %14 = vector.load %arg5[%c0_10, %c0_11] : memref<1x32xf32, #tpu.memory_space<vmem>>, vector<1x32xf32>
    %15 = vector.broadcast %14 : vector<1x32xf32> to vector<8x32xf32>
    %16 = arith.addf %13, %15 : vector<8x32xf32>
    %cst_12 = arith.constant 0.000000e+00 : f32
    %17 = vector.broadcast %cst_12 : f32 to vector<8x32xf32>
    %18 = arith.cmpf ogt, %16, %17 : vector<8x32xf32>
    %19 = math.exp %16 : vector<8x32xf32>
    %cst_13 = arith.constant 1.000000e+00 : f32
    %20 = vector.broadcast %cst_13 : f32 to vector<8x32xf32>
    %21 = arith.subf %19, %20 : vector<8x32xf32>
    %22 = arith.select %18, %16, %21 : vector<8x32xi1>, vector<8x32xf32>
    %c0_14 = arith.constant 0 : index
    %c0_15 = arith.constant 0 : index
    %23 = vector.load %arg6[%c0_14, %c0_15] : memref<8x32xf32, #tpu.memory_space<vmem>>, vector<8x32xf32>
    tpu.vector_store %arg6[%c0_14, %c0_15], %22 {strides = array<i32>} : memref<8x32xf32, #tpu.memory_space<vmem>>, vector<8x32xf32>,
    return
  }
  func.func @transform_0(%arg0: i32) -> (i32, i32) {
    %c0_i32 = arith.constant 0 : i32
    %c0_i32_0 = arith.constant 0 : i32
    return %arg0, %c0_i32 : i32, i32
  }
  func.func @transform_1(%arg0: i32) -> (i32, i32) {
    %c0_i32 = arith.constant 0 : i32
    %c0_i32_0 = arith.constant 0 : i32
    %c0_i32_1 = arith.constant 0 : i32
    return %c0_i32, %c0_i32_0 : i32, i32
  }
  func.func @transform_2(%arg0: i32) -> (i32, i32) {
    %c0_i32 = arith.constant 0 : i32
    %c0_i32_0 = arith.constant 0 : i32
    %c0_i32_1 = arith.constant 0 : i32
    return %c0_i32, %c0_i32_0 : i32, i32
  }
  func.func @transform_3(%arg0: i32) -> (i32, i32) {
    %c0_i32 = arith.constant 0 : i32
    %c0_i32_0 = arith.constant 0 : i32
    %c0_i32_1 = arith.constant 0 : i32
    return %c0_i32, %c0_i32_0 : i32, i32
  }
  func.func @transform_4(%arg0: i32) -> (i32, i32) {
    %c0_i32 = arith.constant 0 : i32
    %c0_i32_0 = arith.constant 0 : i32
    %c0_i32_1 = arith.constant 0 : i32
    return %c0_i32, %c0_i32_0 : i32, i32
  }
  func.func @transform_5(%arg0: i32) -> (i32, i32) {
    %c0_i32 = arith.constant 0 : i32
    %c0_i32_0 = arith.constant 0 : i32
    return %arg0, %c0_i32 : i32, i32
  }
}

</mosaic_0001>

<bundles_post_ra>
// kernel: tpu_custom_call.1
= control target key start
LH: loop header
LB: loop body
LE: loop exit
PB: predicated region body
PF: predicated region fallthrough
CT: control target
= control target key end

     0   :  { %10 = vsyncpa [#allocation3], 0  ;;  %s505_s0 = inlined_call_operand.hbm [shape: f32[8,16], index: 0, kind: input, shape index: {}]   ;;  %s506_s1 = inlined_call_operand.hbm [shape: f32[16,32], index: 1, kind: input, shape index: {}]   ;;  %s507_s2 = inlined_call_operand.vmem [shape: f32[1,32], index: 2, kind: input, shape index: {}]   ;;  %s508_s3 = inlined_call_operand.hbm [shape: f32[32,32], index: 3, kind: input, shape index: {}]   ;;  %s509_s4 = inlined_call_operand.vmem [shape: f32[1,32], index: 4, kind: input, shape index: {}]   ;;  %s510_s5 = inlined_call_operand.hbm [shape: f32[8,32], index: 5, kind: output, shape index: {}]  }
   0x1   :  { %11 = vsyncpa [#allocation6], 0 }
   0x2   :  { %12 = vsyncpa [#allocation4], 0  ;;  %s404_s18 = smov [#allocation5]   ;;  %s310_s22 = scalar_lea.hbm %s506_s1, 256 }
   0x3   :  { %s28_s19 = sshll.u32 %s404_s18, 4  ;;  %p311_p0 = scmp.ne.s32.totalorder %s506_s1, %s310_s22  ;;  %s29_s19 = int_to_ptr.vmem [resolvable:$true] %s28_s19 }
   0x4   :  { %p314_p1 = scmp.lt.u32.totalorder %s310_s22, %s506_s1 }
   0x6   :  { %p316_p2 = pnand %p314_p1, %p311_p0 }
   0x8   :  { %319 = shalt.err (!%p316_p2)
}
   0x9   :  { %s320_s27 = scalar_lea.vmem %s29_s19, 256  ;;  %p325_p4 = scmp.lt.s32.totalorder %s29_s19, %s29_s19 }
   0xa   :  { %p321_p3 = scmp.ne.s32.totalorder %s29_s19, %s320_s27  ;;  %p326_p5 = scmp.lt.s32.totalorder %s320_s27, %s320_s27 }
   0xc   :  { %p327_p6 = por %p326_p5, %p325_p4 }
   0xe   :  { %p328_p7 = pnand %p327_p6, %p321_p3 }
  0x10   :  { %331 = shalt.err (!%p328_p7)
}
  0x11   :  { %s405_s28 = smov 128   ;;  %s406_s29 = smov 8  }
  0x12   :  { %34 = dma.hbm_to_vmem [thread:$0]  %s506_s1, 256, %s29_s19, [#allocation6], %s405_s28, %s405_s28, %s406_s29  }
  0x13   :  { %s407_s7 = smov [#allocation2]   ;;  %s408_s9 = smov [#allocation7]  }
  0x14   :  { %s19_s8 = sshll.u32 %s407_s7, 4  ;;  %s42_s10 = sshll.u32 %s408_s9, 4  ;;  %s20_s8 = int_to_ptr.vmem [resolvable:$true] %s19_s8  ;;  %s43_s10 = int_to_ptr.vmem [resolvable:$true] %s42_s10 }
  0x15   :  { %s332_s13 = scalar_lea.hbm %s505_s0, 128 }
  0x16   :  { %p333_p8 = scmp.ne.s32.totalorder %s505_s0, %s332_s13  ;;  %p336_p9 = scmp.lt.u32.totalorder %s332_s13, %s505_s0 }
  0x18   :  { %p338_p10 = pnand %p336_p9, %p333_p8 }
  0x1a   :  { %341 = shalt.err (!%p338_p10)
}
  0x1b   :  { %s342_s1 = scalar_lea.vmem %s20_s8, 128  ;;  %p347_p12 = scmp.lt.s32.totalorder %s20_s8, %s20_s8 }
  0x1c   :  { %p343_p11 = scmp.ne.s32.totalorder %s20_s8, %s342_s1  ;;  %p348_p13 = scmp.lt.s32.totalorder %s342_s1, %s342_s1 }
  0x1e   :  { %p349_p0 = por %p348_p13, %p347_p12 }
  0x20   :  { %p350_p1 = pnand %p349_p0, %p343_p11 }
  0x22   :  { %353 = shalt.err (!%p350_p1)
}
  0x23   :  { %22 = dma.hbm_to_vmem [thread:$0]  %s505_s0, 128, %s20_s8, [#allocation3]  }
  0x24   :  { %s354_s22 = scalar_lea.hbm %s508_s3, 512 }
  0x25   :  { %p355_p2 = scmp.ne.s32.totalorder %s508_s3, %s354_s22  ;;  %p358_p3 = scmp.lt.u32.totalorder %s354_s22, %s508_s3 }
  0x27   :  { %p360_p4 = pnand %p358_p3, %p355_p2 }
  0x29   :  { %363 = shalt.err (!%p360_p4)
}
  0x2a   :  { %s364_s27 = scalar_lea.vmem %s43_s10, 512  ;;  %p369_p6 = scmp.lt.s32.totalorder %s43_s10, %s43_s10 }
  0x2b   :  { %p365_p5 = scmp.ne.s32.totalorder %s43_s10, %s364_s27  ;;  %p370_p7 = scmp.lt.s32.totalorder %s364_s27, %s364_s27 }
  0x2d   :  { %p371_p8 = por %p370_p7, %p369_p6 }
  0x2f   :  { %p372_p9 = pnand %p371_p8, %p365_p5 }
  0x31   :  { %375 = shalt.err (!%p372_p9)
}
  0x32   :  { %48 = dma.hbm_to_vmem [thread:$0]  %s508_s3, 512, %s43_s10, [#allocation6], %s405_s28, %s405_s28, %s406_s29  }
  0x33   :  { %398 = dma.done.wait [#allocation3], 128  }
  0x34   :  { %399 = vsyncadd [#allocation3], 4294967168 }
  0x35   :  { %400 = dma.done.wait [#allocation6], 768  }
  0x36   :  { %401 = vsyncadd [#allocation6], 4294966528  ;;  %v409_v0 = vmov 0.0|0.0   ;;  %vm410_vm0 = vmmov 0   ;;  %v411_v1 = vmov 0.0   ;;  %v61_v2 = vld [vmem:[#allocation5] sm:$0xff] }
  0x37   :  { %288 = vmatprep.subr.bf16.mxu0 %v409_v0  ;;  %274 = vmatprep.mubr.msk.f32.mxu0 %vm410_vm0, %v411_v1  ;;  %v62_v3 = vld [vmem:[#allocation5 + $0x8] sm:$0xff]  ;;  %v60_v5 = vld [vmem:[#allocation2] sm:$0xff]  ;;  %vm70_vm1 = vcmask 130048   ;;  %v149_v6 = vld [vmem:[#allocation7] sm:$0xff]  ;;  %vm160_vm2 = vcmask 261120  }
  0x38   :  { %291 = vmatprep.subr.bf16.mxu1 %v409_v0  ;;  %285 = vmatprep.mubr.msk.f32.mxu1 %vm410_vm0, %v411_v1  ;;  %v289_v4 = vpack.c.bf16 %v62_v3, %v61_v2  ;;  %v150_v7 = vld [vmem:[#allocation7 + $0x8] sm:$0xff]  ;;  %v151_v8 = vld [vmem:[#allocation7 + $0x10] sm:$0xff]  ;;  %v152_v10 = vld [vmem:[#allocation7 + $0x18] sm:$0xff] }
  0x39   :  { %v292_v9 = vpack.c.bf16 %v150_v7, %v149_v6  ;;  %v295_v11 = vpack.c.bf16 %v152_v10, %v151_v8  ;;  %v256_v12 = vld [vmem:[%s507_s2] ss:$0 sm:$0xff]  ;;  %s412_s2 = smov [#allocation8]  }
  0x3a   :  { %290 = vmatpush3.bf16.msra.mxu0 %v289_v4  ;;  %v259_v20 = vld [vmem:[%s509_s4] ss:$0 sm:$0xff]  ;;  %s246_s7 = sshll.u32 %s412_s2, 4  ;;  %s247_s7 = int_to_ptr.vmem [resolvable:$true] %s246_s7 }
  0x3b   :  { %293 = vmatpush3.bf16.msra.mxu1 %v292_v9  ;;  %s376_s8 = scalar_lea.vmem %s247_s7, 128  ;;  %p381_p11 = scmp.lt.s32.totalorder %s247_s7, %s247_s7 }
  0x3c   :  { %294 = vmatprep.subr.bf16.mxu1 %v409_v0  ;;  %p377_p10 = scmp.ne.s32.totalorder %s247_s7, %s376_s8  ;;  %p382_p12 = scmp.lt.s32.totalorder %s376_s8, %s376_s8 }
  0x3d   :  { %275 = vmatmul.mubr.msk.f32.vlgmr.msra.gmra.mrb[0].mxu0 %vm70_vm1, %v60_v5 }
  0x3e   :  { %p383_p13 = por %p382_p12, %p381_p11 }
  0x3f   :  { %296 = vmatpush3.bf16.msra.mxu1 %v295_v11 }
  0x40   :  { %p384_p0 = pnand %p383_p13, %p377_p10 }
 0x110   :  { %v140_v13 = vpop.f32.mrb[0].mxu0 }
 0x111   :  { %v141_v14 = vadd.f32 %v256_v12, %v140_v13  ;;  %v276_v15 = vpop.f32.mrb[1].mxu0 }
 0x113   :  { %v145_v16 = vmul.f32 1.442695, %v141_v14  ;;  %vm144_vm3 = vcmp.gt.f32.partialorder %v141_v14, 0.0 }
 0x115   :  { %306 = vpow2.f32 %v145_v16 }
 0x11f   :  { %v307_v17 = vpop.eup %306 }
 0x120   :  { %v258_v18 = vadd.f32 -1.0, %v307_v17 }
 0x122   :  { %v148_v19 = vsel %vm144_vm3, %v141_v14, %v258_v18 }
 0x123   :  { %286 = vmatmul.mubr.msk.f32.vlgmr.msra.gmra.mrb[0].mxu1 %vm160_vm2, %v148_v19 }
 0x1f6   :  { %v230_v21 = vpop.f32.mrb[0].mxu1 }
 0x1f7   :  { %v231_v22 = vadd.f32 %v259_v20, %v230_v21  ;;  %v287_v23 = vpop.f32.mrb[1].mxu1 }
 0x1f9   :  { %v235_v24 = vmul.f32 1.442695, %v231_v22  ;;  %vm234_vm4 = vcmp.gt.f32.partialorder %v231_v22, 0.0 }
 0x1fb   :  { %308 = vpow2.f32 %v235_v24 }
 0x205   :  { %v309_v25 = vpop.eup %308 }
 0x206   :  { %v261_v26 = vadd.f32 -1.0, %v309_v25 }
 0x208   :  { %v238_v27 = vsel %vm234_vm4, %v231_v22, %v261_v26 }
 0x209   :  { %239 = vst.msk [vmem:[#allocation8] sm:$0xff] %vm160_vm2, %v238_v27 }
 0x20a   :  { %387 = shalt.err (!%p384_p0)
}
 0x20b   :  { %s388_s10 = scalar_lea.hbm %s510_s5, 128 }
 0x20c   :  { %p389_p1 = scmp.ne.s32.totalorder %s510_s5, %s388_s10  ;;  %p392_p2 = scmp.lt.u32.totalorder %s388_s10, %s510_s5 }
 0x20e   :  { %p394_p3 = pnand %p392_p2, %p389_p1 }
 0x210   :  { %397 = shalt.err (!%p394_p3)
}
 0x211   :  { %249 = dma.vmem_to_hbm [thread:$0]  %s247_s7, 128, %s510_s5, [#allocation4]  }
 0x212   :  { %402 = dma.done.wait [#allocation4], 128  }
 0x213   :  { %403 = vsyncadd [#allocation4], 4294967168 }
 0x214   :  { %253 = vsyncpa [#allocation3], 1 }
 0x215   :  { %254 = vsyncpa [#allocation6], 1 }
 0x216   :  { %255 = vsyncpa [#allocation4], 1 }

</bundles_post_ra>
